<compile_context>
chip_gen: v7x
topology: tpu7x:2x2x1
jax: 0.10.0
libtpu: 0.0.40
codegen_flags: <defaults>
</compile_context>

<pallas_src>
import functools

import jax
import jax.numpy as jnp
from jax import lax
from jax.experimental import pallas as pl
from jax.experimental.pallas import tpu as pltpu


def _round_up(v, m):
    return (v + m - 1) // m * m


def _softplus(v):
    # Numerically stable softplus in f32 (matches F.softplus).  softplus(-1e30) == 0
    # exactly, which keeps padded Q/K rows inert.
    return jnp.maximum(v, 0.0) + jnp.log1p(jnp.exp(-jnp.abs(v)))


def _vmem_budget_bytes():
    """Generation-aware VMEM budget (v7x has 64 MiB/TC vs 128 MiB on v5e/v6e)."""
    try:
        cap = int(pltpu.get_tpu_info().vmem_capacity_bytes)
    except Exception:           # conservative fallback if the query is unavailable
        cap = 64 << 20
    # leave headroom for Mosaic internal scratch: ~56 MiB on v7x, ~100 MiB on v5e/v6e
    return max(min(cap - (8 << 20), 100 << 20), 24 << 20)


# ----------------------------------------------------------------------------------
# Kernel bodies
# ----------------------------------------------------------------------------------
def _fused_kernel(x_ref, w_ref, b_ref, gamma_ref, o_ref, *,
                  C, Mp, Cpad, Cv, eps, n_valid):
    """Single-pass kernel: one (C, Np) slab per batch element."""
    xc = x_ref[0]                                   # (C, Nt), input dtype
    mm = w_ref.dtype                                # matmul operand dtype (bf16)

    # One stacked projection matmul for Q, K, V(+ones row):
    # rows [0,Mp)=Wq_pad, [Mp,2Mp)=Wk_pad, [2Mp,2Mp+Cv)=V-aug (ones row at Cpad).
    proj = jnp.dot(w_ref[...], xc.astype(mm),
                   preferred_element_type=jnp.float32) + b_ref[...]    # (R, Nt) f32

    qk = _softplus(proj[0:2 * Mp])                  # padded rows are exactly 0
    q = qk[0:Mp]                                    # (Mp, Nt)
    k = qk[Mp:2 * Mp]                               # (Mp, Nt)
    vaug = proj[2 * Mp:2 * Mp + Cv]                 # (Cv, Nt)

    if n_valid < xc.shape[-1]:                      # static: lane padding present
        col = lax.broadcasted_iota(jnp.int32, k.shape, 1)
        k = jnp.where(col < n_valid, k, 0.0)        # padded columns must not reach KV

    # KV^T with the K-rowsum folded in via the ones row of vaug.  NT-form contraction
    # on the lane axis; the small (Mp, Nt) operand (k, the RHS) is the transposed one.
    kvT = lax.dot_general(vaug.astype(mm), k.astype(mm),
                          (((1,), (1,)), ((), ())),
                          preferred_element_type=jnp.float32)          # (Cv, Mp)
    row = lax.broadcasted_iota(jnp.int32, (Cv, Mp), 0)
    kvT = kvT + jnp.where(row == Cpad, jnp.float32(eps), jnp.float32(0.0))

    final = jnp.dot(kvT.astype(mm), q.astype(mm),
                    preferred_element_type=jnp.float32)                # (Cv, Nt)
    num = final[0:C]                                # numerator rows
    denom = final[Cpad:Cpad + 1]                    # 8-aligned denominator row
    norm = pl.reciprocal(denom, approx=True)        # EUP slot; denom > 0

    o_ref[0] = (xc + gamma_ref[0] * (num * norm)).astype(o_ref.dtype)


def _kv_accum_kernel(x_ref, w_ref, b_ref, kv_ref, *,
                     Mp, Cpad, Cv, eps, n_valid, n_total):
    """Pass 1 of the N-tiled path: accumulate KV^T (+eps on ones row) over N tiles."""
    nt = pl.program_id(1)
    xc = x_ref[0]                                   # (C, Nt)
    mm = w_ref.dtype

    proj = jnp.dot(w_ref[...], xc.astype(mm),
                   preferred_element_type=jnp.float32) + b_ref[...]    # (Mp+Cv, Nt)
    k = _softplus(proj[0:Mp])                       # (Mp, Nt); padded rows exactly 0
    vaug = proj[Mp:Mp + Cv]                         # (Cv, Nt)

    if n_valid < n_total:                           # static: lane padding present
        col = lax.broadcasted_iota(jnp.int32, k.shape, 1) + nt * xc.shape[-1]
        k = jnp.where(col < n_valid, k, 0.0)

    contrib = lax.dot_general(vaug.astype(mm), k.astype(mm),
                              (((1,), (1,)), ((), ())),
                              preferred_element_type=jnp.float32)      # (Cv, Mp)

    @pl.when(nt == 0)
    def _():
        row = lax.broadcasted_iota(jnp.int32, (Cv, Mp), 0)
        kv_ref[0] = jnp.where(row == Cpad, jnp.float32(eps), jnp.float32(0.0))

    kv_ref[0] = kv_ref[0] + contrib                 # block resident across the N axis


def _output_kernel(x_ref, w_ref, b_ref, kv_ref, gamma_ref, o_ref, *, C, Cpad):
    """Pass 2 of the N-tiled path: recompute Q per tile and emit the output tile."""
    xc = x_ref[0]                                   # (C, Nt)
    mm = w_ref.dtype

    proj = jnp.dot(w_ref[...], xc.astype(mm),
                   preferred_element_type=jnp.float32) + b_ref[...]    # (Mp, Nt)
    q = _softplus(proj)                             # padded rows exactly 0

    final = jnp.dot(kv_ref[0].astype(mm), q.astype(mm),
                    preferred_element_type=jnp.float32)                # (Cv, Nt)
    num = final[0:C]
    denom = final[Cpad:Cpad + 1]
    norm = pl.reciprocal(denom, approx=True)

    o_ref[0] = (xc + gamma_ref[0] * (num * norm)).astype(o_ref.dtype)


# ----------------------------------------------------------------------------------
# Wrapper
# ----------------------------------------------------------------------------------
def kernel_attention(x, wq, bq, wk, bk, wv, bv, gamma, *, eps=1e-6, n_tile=None,
                     mm_dtype=jnp.bfloat16):
    """x: (B, C, H, W). Returns (B, C, H, W) in x.dtype."""
    B, C, H, W = x.shape
    # The PyTorch forward adds a (B, C, W, H)-view of weight_value back onto x; the
    # semantics are only well-defined for square inputs.
    assert H == W, "KernelAttention forward requires H == W"
    N = H * W
    M = wq.shape[0]

    f32 = jnp.float32
    Mp = _round_up(max(M, 1), 8)       # Q/K rows padded to a sublane multiple
    Cpad = _round_up(C, 8)             # 8-aligned index of the ones (denominator) row
    Cv = Cpad + 8                      # V rows + ones row + sublane padding
    NEG = f32(-1e30)                   # softplus(-1e30) == 0 exactly

    def _rows(w, b, rows, pad_bias):
        wpad = jnp.zeros((rows, C), f32).at[:w.shape[0]].set(w.astype(f32))
        bpad = jnp.full((rows,), pad_bias, f32).at[:b.shape[0]].set(b.astype(f32))
        return wpad, bpad

    wq_p, bq_p = _rows(wq, bq, Mp, NEG)            # padded rows -> softplus == 0
    wk_p, bk_p = _rows(wk, bk, Mp, NEG)
    wv_p, bv_p = _rows(wv, bv, Cv, f32(0.0))
    bv_p = bv_p.at[Cpad].set(1.0)                  # constant-ones "channel" -> K rowsum

    # --- VMEM planning (generation-aware; v7x has only 64 MiB/TC) -------------------
    budget = _vmem_budget_bytes()
    # rough per-lane-column live-VMEM bytes for the heaviest pass (double-buffered
    # f32 x/out blocks, f32 intermediates, bf16 matmul-operand casts), ~30% slack:
    per_col = int(1.3 * (24 * C + 20 * Mp + 12 * Cv)) + 64
    fixed = 4 << 20                                # weights/biases/kvT + compiler scratch
    avail = max(budget - fixed, 2 << 20)
    nt_fit = max(128, (avail // per_col) // 128 * 128)

    Np128 = _round_up(N, 128)                      # lane-dense N (full-lane vst writes)
    if n_tile is not None:
        Nt = max(128, _round_up(int(n_tile), 128))
    else:
        Nt = min(Np128, nt_fit)                    # prefer one slab; else N-tiled 2-pass
        if B == 1 and Np128 >= 1024:
            # keep >= 2 parallel grid steps so both v7x TensorCores get work
            Nt = max(128, min(Nt, (Np128 // 2) // 128 * 128))
    Np = _round_up(N, Nt)
    nN = Np // Nt

    x_flat = x.reshape(B, C, N)                    # keep HBM I/O in the model dtype
    if Np != N:
        x_flat = jnp.pad(x_flat, ((0, 0), (0, 0), (0, Np - N)))
    gamma_s = gamma.reshape(1).astype(f32)

    def _cparams(sem):
        return pltpu.CompilerParams(dimension_semantics=sem,
                                    vmem_limit_bytes=int(budget))

    smem = pl.BlockSpec(memory_space=pltpu.MemorySpace.SMEM)
    # NOTE: pipeline_mode=pl.Buffered(1) on the loop-invariant weight/bias specs would
    # drop their redundant second buffer (pure VMEM hygiene); left at defaults here.
    # TODO(synk): process >1 batch elements per grid step (fori_loop over a (Bt,C,Nt)
    # block) to further amortize per-step overhead for many tiny images.
    # TODO(synk): very large C would additionally require channel tiling of the V rows.

    if nN == 1:
        # --- fused single pass: one (C, Np) slab per batch element -------------------
        R = 2 * Mp + Cv
        w_all = jnp.concatenate([wq_p, wk_p, wv_p], 0).astype(mm_dtype)   # (R, C) bf16
        b_all = jnp.concatenate([bq_p, bk_p, bv_p], 0).reshape(R, 1)      # f32

        out_flat = pl.pallas_call(
            functools.partial(_fused_kernel, C=C, Mp=Mp, Cpad=Cpad, Cv=Cv,
                              eps=eps, n_valid=N),
            out_shape=jax.ShapeDtypeStruct((B, C, Np), x.dtype),
            grid_spec=pltpu.PrefetchScalarGridSpec(
                num_scalar_prefetch=0,
                grid=(B,),
                in_specs=[
                    pl.BlockSpec((1, C, Np), lambda b: (b, 0, 0)),   # x
                    pl.BlockSpec((R, C), lambda b: (0, 0)),          # stacked W (bf16)
                    pl.BlockSpec((R, 1), lambda b: (0, 0)),          # stacked bias (f32)
                    smem,                                            # gamma
                ],
                out_specs=pl.BlockSpec((1, C, Np), lambda b: (b, 0, 0)),
            ),
            compiler_params=_cparams(("parallel",)),
        )(x_flat, w_all, b_all, gamma_s)
    else:
        # --- two-pass N-tiled pipeline (keeps live VMEM bounded, e.g. on v7x) --------
        # pass 1: accumulate KV^T over N tiles for each batch element.
        R1 = Mp + Cv
        w_kv = jnp.concatenate([wk_p, wv_p], 0).astype(mm_dtype)          # (R1, C)
        b_kv = jnp.concatenate([bk_p, bv_p], 0).reshape(R1, 1)
        kvT = pl.pallas_call(
            functools.partial(_kv_accum_kernel, Mp=Mp, Cpad=Cpad, Cv=Cv,
                              eps=eps, n_valid=N, n_total=Np),
            out_shape=jax.ShapeDtypeStruct((B, Cv, Mp), jnp.float32),
            grid_spec=pltpu.PrefetchScalarGridSpec(
                num_scalar_prefetch=0,
                grid=(B, nN),                       # reduction (N) axis last
                in_specs=[
                    pl.BlockSpec((1, C, Nt), lambda b, n: (b, 0, n)),
                    pl.BlockSpec((R1, C), lambda b, n: (0, 0)),
                    pl.BlockSpec((R1, 1), lambda b, n: (0, 0)),
                ],
                out_specs=pl.BlockSpec((1, Cv, Mp), lambda b, n: (b, 0, 0)),
            ),
            compiler_params=_cparams(("parallel", "arbitrary")),
        )(x_flat, w_kv, b_kv)

        # pass 2: recompute Q per N tile (cheap small matmul + softplus) and emit the
        # normalized output tile; both grid axes are parallel.
        w_qs = wq_p.astype(mm_dtype)                                       # (Mp, C)
        b_qs = bq_p.reshape(Mp, 1)
        out_flat = pl.pallas_call(
            functools.partial(_output_kernel, C=C, Cpad=Cpad),
            out_shape=jax.ShapeDtypeStruct((B, C, Np), x.dtype),
            grid_spec=pltpu.PrefetchScalarGridSpec(
                num_scalar_prefetch=0,
                grid=(B, nN),
                in_specs=[
                    pl.BlockSpec((1, C, Nt), lambda b, n: (b, 0, n)),
                    pl.BlockSpec((Mp, C), lambda b, n: (0, 0)),
                    pl.BlockSpec((Mp, 1), lambda b, n: (0, 0)),
                    pl.BlockSpec((1, Cv, Mp), lambda b, n: (b, 0, 0)),
                    smem,                                                  # gamma
                ],
                out_specs=pl.BlockSpec((1, C, Nt), lambda b, n: (b, 0, n)),
            ),
            compiler_params=_cparams(("parallel", "parallel")),
        )(x_flat, w_qs, b_qs, kvT, gamma_s)

    if Np != N:
        out_flat = out_flat[:, :, :N]
    # weight_value.view(B, C, H, W) followed by x + gamma*wv; with H == W the flat
    # element ordering is identical, so a plain reshape matches.
    return out_flat.reshape(B, C, H, W)


# ----------------------------------------------------------------------------------
# Pure-JAX reference mirroring the PyTorch forward exactly
# ----------------------------------------------------------------------------------
def kernel_attention_ref(x, wq, bq, wk, bk, wv, bv, gamma, *, eps=1e-6):
    B, C, H, W = x.shape
    N = H * W
    xf = x.reshape(B, C, N)
    Q = jnp.einsum('mc,bcn->bmn', wq, xf) + bq[None, :, None]
    K = jnp.einsum('mc,bcn->bmn', wk, xf) + bk[None, :, None]
    V = jnp.einsum('oc,bcn->bon', wv, xf) + bv[None, :, None]
    Q = jax.nn.softplus(Q).transpose(0, 2, 1)       # (B, N, M)
    K = jax.nn.softplus(K)                          # (B, M, N)
    KV = jnp.einsum('bmn,bcn->bmc', K, V)           # (B, M, C)
    norm = 1.0 / jnp.einsum('bnm,bm->bn', Q, jnp.sum(K, axis=-1) + eps)
    wv_out = jnp.einsum('bnm,bmc,bn->bcn', Q, KV, norm)
    return x + gamma.reshape(()) * wv_out.reshape(B, C, H, W)


if __name__ == "__main__":
    key = jax.random.PRNGKey(0)

    def make_inputs(case_id, B, C, S, scale):
        M = max(C // scale, 1)
        k = jax.random.split(jax.random.fold_in(key, case_id), 8)
        x = jax.random.normal(k[0], (B, C, S, S), jnp.float32)
        wq = jax.random.normal(k[1], (M, C), jnp.float32) * 0.25
        bq = jax.random.normal(k[2], (M,), jnp.float32) * 0.25
        wk = jax.random.normal(k[3], (M, C), jnp.float32) * 0.25
        bk = jax.random.normal(k[4], (M,), jnp.float32) * 0.25
        wv = jax.random.normal(k[5], (C, C), jnp.float32) * 0.25
        bv = jax.random.normal(k[6], (C,), jnp.float32) * 0.25
        # Module __init__ sets gamma=0 (output would equal x); use a nonzero gamma so
        # the attention path is actually exercised.
        gamma = jnp.array([1.3], jnp.float32)
        return (x, wq, bq, wk, bk, wv, bv, gamma)

    cases = [
        # (B, C, S, scale, n_tile)
        (2, 32, 16, 8, None),   # fused single-pass, lane-aligned N=256
        (2, 20, 20, 4, None),   # fused path: N=400 padded to 512 (+ mask), C not %8
        (2, 20, 20, 4, 128),    # forced N tiling -> two-pass KV-accumulation path
    ]
    for i, (B, C, S, scale, n_tile) in enumerate(cases):
        args = make_inputs(i, B, C, S, scale)
        out = kernel_attention(*args, n_tile=n_tile)
        out = jax.block_until_ready(out)
        ref = kernel_attention_ref(*args)
        assert out.shape == ref.shape
        err = float(jnp.max(jnp.abs(out - ref)))
        # bf16 MXU operands (f32 accumulation) + EUP approximate reciprocal; estimated
        # worst-case error is a few 1e-3 at these magnitudes.
        assert jnp.allclose(out, ref, atol=1e-2, rtol=2e-2), \
            f"case {i} ({B},{C},{S},{scale},{n_tile}): max err {err}"

    print("KERNEL_OK")
</pallas_src>

<mosaic_0001>
module attributes {stable_mosaic.version = 11 : i64} {
  func.func @_fused_kernel(%arg0: i32, %arg1: memref<1x32x256xf32, #tpu.memory_space<vmem>>, %arg2: memref<56x32xbf16, #tpu.memory_space<vmem>>, %arg3: memref<56x1xf32, #tpu.memory_space<vmem>>, %arg4: memref<1xf32, #tpu.memory_space<smem>>, %arg5: memref<1x32x256xf32, #tpu.memory_space<vmem>>) attributes {dimension_semantics = [#tpu.dimension_semantics<parallel>], iteration_bounds = array<i64: 2>, scalar_prefetch = 0 : i64, scratch_operands = 0 : i64, tpu.core_type = #tpu.core_type<tc>, window_params = [{transform_indices = @transform_0, window_bounds = array<i64: 1, 32, 256>}, {pipeline_mode = #tpu.pipeline_mode<synchronous>, transform_indices = @transform_1, window_bounds = array<i64: 56, 32>}, {pipeline_mode = #tpu.pipeline_mode<synchronous>, transform_indices = @transform_2, window_bounds = array<i64: 56, 1>}, {transform_indices = @transform_3, window_bounds = array<i64: 1>}, {transform_indices = @transform_4, window_bounds = array<i64: 1, 32, 256>}]} {
    %c0 = arith.constant 0 : index
    %c0_0 = arith.constant 0 : index
    %c0_1 = arith.constant 0 : index
    %0 = vector.load %arg1[%c0, %c0_0, %c0_1] : memref<1x32x256xf32, #tpu.memory_space<vmem>>, vector<1x32x256xf32>
    %1 = vector.shape_cast %0 : vector<1x32x256xf32> to vector<32x256xf32>
    %c0_2 = arith.constant 0 : index
    %c0_3 = arith.constant 0 : index
    %2 = vector.load %arg2[%c0_2, %c0_3] : memref<56x32xbf16, #tpu.memory_space<vmem>>, vector<56x32xbf16>
    %3 = arith.truncf %1 : vector<32x256xf32> to vector<32x256xbf16>
    %cst = arith.constant dense<0.000000e+00> : vector<56x256xf32>
    %4 = tpu.matmul %2, %3, %cst {dimension_numbers = #tpu.dot_dimension_numbers<[1], [0], [0], [1], [0, 0, 1, 1], [], []>} : vector<56x32xbf16>, vector<32x256xbf16>, vector<56x256xf32> -> vector<56x256xf32>
    %c0_4 = arith.constant 0 : index
    %c0_5 = arith.constant 0 : index
    %5 = vector.load %arg3[%c0_4, %c0_5] : memref<56x1xf32, #tpu.memory_space<vmem>>, vector<56x1xf32>
    %6 = vector.broadcast %5 : vector<56x1xf32> to vector<56x256xf32>
    %7 = arith.addf %4, %6 : vector<56x256xf32>
    %8 = vector.extract_strided_slice %7 {offsets = [0, 0], sizes = [16, 256], strides = [1, 1]} : vector<56x256xf32> to vector<16x256xf32>
    %cst_6 = arith.constant 0.000000e+00 : f32
    %9 = vector.broadcast %cst_6 : f32 to vector<16x256xf32>
    %10 = arith.maximumf %8, %9 : vector<16x256xf32>
    %11 = math.absf %8 : vector<16x256xf32>
    %cst_7 = arith.constant 0.000000e+00 : f32
    %12 = vector.broadcast %cst_7 : f32 to vector<16x256xf32>
    %13 = arith.subf %12, %11 : vector<16x256xf32>
    %14 = math.exp %13 : vector<16x256xf32>
    %15 = math.log1p %14 : vector<16x256xf32>
    %16 = arith.addf %10, %15 : vector<16x256xf32>
    %17 = vector.extract_strided_slice %16 {offsets = [0, 0], sizes = [8, 256], strides = [1, 1]} : vector<16x256xf32> to vector<8x256xf32>
    %18 = vector.extract_strided_slice %16 {offsets = [8, 0], sizes = [8, 256], strides = [1, 1]} : vector<16x256xf32> to vector<8x256xf32>
    %19 = vector.extract_strided_slice %7 {offsets = [16, 0], sizes = [40, 256], strides = [1, 1]} : vector<56x256xf32> to vector<40x256xf32>
    %20 = arith.truncf %19 : vector<40x256xf32> to vector<40x256xbf16>
    %21 = arith.truncf %18 : vector<8x256xf32> to vector<8x256xbf16>
    %cst_8 = arith.constant dense<0.000000e+00> : vector<40x8xf32>
    %22 = tpu.matmul %20, %21, %cst_8 {dimension_numbers = #tpu.dot_dimension_numbers<[1], [1], [0], [0], [0, 0, 1, 0], [], []>} : vector<40x256xbf16>, vector<8x256xbf16>, vector<40x8xf32> -> vector<40x8xf32>
    %23 = tpu.iota {dimensions = array<i32: 0>} : vector<40x8xi32>
    %c32_i32 = arith.constant 32 : i32
    %24 = vector.broadcast %c32_i32 : i32 to vector<40x8xi32>
    %25 = arith.cmpi eq, %23, %24 : vector<40x8xi32>
    %cst_9 = arith.constant 9.99999997E-7 : f32
    %cst_10 = arith.constant 0.000000e+00 : f32
    %26 = vector.broadcast %cst_9 : f32 to vector<40x8xf32>
    %27 = vector.broadcast %cst_10 : f32 to vector<40x8xf32>
    %28 = arith.select %25, %26, %27 : vector<40x8xi1>, vector<40x8xf32>
    %29 = arith.addf %22, %28 : vector<40x8xf32>
    %30 = arith.truncf %29 : vector<40x8xf32> to vector<40x8xbf16>
    %31 = arith.truncf %17 : vector<8x256xf32> to vector<8x256xbf16>
    %cst_11 = arith.constant dense<0.000000e+00> : vector<40x256xf32>
    %32 = tpu.matmul %30, %31, %cst_11 {dimension_numbers = #tpu.dot_dimension_numbers<[1], [0], [0], [1], [0, 0, 1, 1], [], []>} : vector<40x8xbf16>, vector<8x256xbf16>, vector<40x256xf32> -> vector<40x256xf32>
    %33 = vector.extract_strided_slice %32 {offsets = [0, 0], sizes = [32, 256], strides = [1, 1]} : vector<40x256xf32> to vector<32x256xf32>
    %34 = vector.extract_strided_slice %32 {offsets = [32, 0], sizes = [1, 256], strides = [1, 1]} : vector<40x256xf32> to vector<1x256xf32>
    %35 = tpu.reciprocal %34 {approx = true} : vector<1x256xf32> -> vector<1x256xf32>
    %c0_12 = arith.constant 0 : index
    %36 = memref.load %arg4[%c0_12] : memref<1xf32, #tpu.memory_space<smem>>
    %37 = vector.broadcast %35 : vector<1x256xf32> to vector<32x256xf32>
    %38 = arith.mulf %33, %37 : vector<32x256xf32>
    %39 = vector.broadcast %36 : f32 to vector<32x256xf32>
    %40 = arith.mulf %39, %38 : vector<32x256xf32>
    %41 = arith.addf %1, %40 : vector<32x256xf32>
    %c0_13 = arith.constant 0 : index
    %c0_14 = arith.constant 0 : index
    %c0_15 = arith.constant 0 : index
    %42 = vector.load %arg5[%c0_13, %c0_14, %c0_15] : memref<1x32x256xf32, #tpu.memory_space<vmem>>, vector<1x32x256xf32>
    %43 = vector.shape_cast %42 : vector<1x32x256xf32> to vector<32x256xf32>
    %44 = vector.shape_cast %41 : vector<32x256xf32> to vector<1x32x256xf32>
    tpu.vector_store %arg5[%c0_13, %c0_14, %c0_15], %44 {strides = array<i32>} : memref<1x32x256xf32, #tpu.memory_space<vmem>>, vector<1x32x256xf32>,
    return
  }
  func.func @transform_0(%arg0: i32) -> (i32, i32, i32) {
    %c0_i32 = arith.constant 0 : i32
    %c0_i32_0 = arith.constant 0 : i32
    %c0_i32_1 = arith.constant 0 : i32
    return %arg0, %c0_i32, %c0_i32_0 : i32, i32, i32
  }
  func.func @transform_1(%arg0: i32) -> (i32, i32) {
    %c0_i32 = arith.constant 0 : i32
    %c0_i32_0 = arith.constant 0 : i32
    %c0_i32_1 = arith.constant 0 : i32
    return %c0_i32, %c0_i32_0 : i32, i32
  }
  func.func @transform_2(%arg0: i32) -> (i32, i32) {
    %c0_i32 = arith.constant 0 : i32
    %c0_i32_0 = arith.constant 0 : i32
    %c0_i32_1 = arith.constant 0 : i32
    return %c0_i32, %c0_i32_0 : i32, i32
  }
  func.func @transform_3(%arg0: i32) -> i32 {
    %c0_i32 = arith.constant 0 : i32
    %c0_i32_0 = arith.constant 0 : i32
    return %c0_i32 : i32
  }
  func.func @transform_4(%arg0: i32) -> (i32, i32, i32) {
    %c0_i32 = arith.constant 0 : i32
    %c0_i32_0 = arith.constant 0 : i32
    %c0_i32_1 = arith.constant 0 : i32
    return %arg0, %c0_i32, %c0_i32_0 : i32, i32, i32
  }
}

</mosaic_0001>

<bundles_post_ra>
// kernel: tpu_custom_call.1
= control target key start
LH: loop header
LB: loop body
LE: loop exit
PB: predicated region body
PF: predicated region fallthrough
CT: control target
= control target key end

     0   :  { %s1261_s0 = inlined_call_operand.hbm [shape: f32[2,32,256], index: 0, kind: input, shape index: {}]   ;;  %s1262_s1 = inlined_call_operand.vmem [shape: bf16[56,32], index: 1, kind: input, shape index: {}]   ;;  %s1263_s2 = inlined_call_operand.vmem [shape: f32[56,1], index: 2, kind: input, shape index: {}]   ;;  %s1264_s3 = inlined_call_operand.<no memory space> [shape: f32[1], index: 3, kind: input, shape index: {}]   ;;  %s1265_s4 = inlined_call_operand.hbm [shape: f32[2,32,256], index: 4, kind: output, shape index: {}]  }
   0x1   :  { %9 = sst [smem:[#allocation2]] %s1264_s3 }
   0x2   :  { %10 = vsyncpa [#allocation4], 0 }
   0x3   :  { %12 = vsyncpa [#allocation4 + $0x1], 0 }
   0x4   :  { %13 = vsyncpa [#allocation5], 0 }
   0x5   :  { %15 = vsyncpa [#allocation5 + $0x1], 0  ;;  %s977_s17 = smov 0   ;;  %s979_s18 = smov 0  }
   0x6   :  { %s981_s19 = smov 0   ;;  %s983_s20 = smov 0  }
   0x7 LB: > { %s998_s3 = sadd.s32 4294967295, %s939_s20   ;;  %s735_s21 = sadd.s32 4294967294, %s939_s20   ;;  %s939_s20 = sphi %s983_s20, %s1278_s20   ;;  %s935_s19 = sphi %s981_s19, %s1277_s19   ;;  %s931_s18 = sphi %s979_s18, %s1276_s18   ;;  %s927_s17 = sphi %s977_s17, %s1275_s17  }
   0x8   : > { %s1002_s22 = sadd.s32 1, %s939_s20   ;;  %s28_s23 = sadd.s32 1, %s935_s19 }
   0x9   : > { %s25_s24 = ssub.s32 %s939_s20, %s1002_s22  ;;  %p35_p0 = scmp.ne.s32.totalorder %s935_s19, %s931_s18 }
   0xa   : > { %p26_p1 = scmp.eq.s32.totalorder %s25_s24, 0  ;;  %p36_p2 = scmp.eq.s32.totalorder %s939_s20, 0 }
   0xb   : > { %p41_p3 = scmp.ne.s32.totalorder %s931_s18, %s927_s17  ;;  %p42_p4 = scmp.eq.s32.totalorder %s998_s3, 0 }
   0xc   : > { %s1014_s25 = scalar_select %p26_p1, %s935_s19, %s28_s23  }
   0xd   : > { %p1016_p5 = por %p36_p2, %p35_p0  ;;  %p1020_p6 = por %p42_p4, %p41_p3 }
   0xe   : > { %p128_p7 = scmp.eq.s32.totalorder %s998_s3, 1  ;;  %p134_p8 = scmp.eq.s32.totalorder %s735_s21, 1 }
   0xf   : > { %p777_p10 = scmp.lt.s32.totalorder %s939_s20, 2  ;;  %s163_s30 = sand.u32 1, %s935_s19  }
  0x10   : > { %p1027_p11 = por %p128_p7, %p35_p0  ;;  %p1031_p12 = por %p134_p8, %p41_p3 }
  0x11   : > { %s761_s5 = sshll.u32 %s939_s20, 10  ;;  %s738_s6 = sshll.u32 %s163_s30, 6 }
  0x12   : > { %s1269_s28 = scalar_select %p1027_p11, 1, 0 }
  0x13   : > { %s1270_s29 = scalar_select %p1031_p12, 1, 0 }
  0x14   : > { %s1040_s9 = scalar_lea.hbm %s1261_s0, %s761_s5  ;;  %s167_s10 = scalar_lea.vmem [#allocation3], %s738_s6 }
  0x15   : > { %s174_s11 = sshll.u32 %s167_s10, 4  ;;  %p1044_p13 = pnand %p777_p10, %p1016_p5  ;;  %s1048_s11 = int_to_ptr.vmem [resolvable:$true] %s174_s11 }
  0x16   : > { %s1050_s13 = scalar_lea.sflag [#allocation4], %s163_s30  ;;  %s843_s14 = scalar_lea.hbm %s1040_s9, 1024 }
  0x17   : > { %p844_p0 = scmp.ne.s32.totalorder %s1040_s9, %s843_s14  ;;  %p845_p1 = pneg %p1044_p13 }
  0x18   : > { %s848_s21 = scalar_lea.hbm %s1261_s0, 2048  ;;  %p849_p4 = scmp.lt.u32.totalorder %s1040_s9, %s1261_s0 }
  0x19   : > { %p846_p2 = pnand %p845_p1, %p844_p0  ;;  %p850_p5 = scmp.lt.u32.totalorder %s848_s21, %s843_s14 }
  0x1a   : > { %p852_p8 = scmp.lt.u32.totalorder %s843_s14, %s1040_s9 }
  0x1b   : > { %p847_p3 = pneg %p846_p2  ;;  %p851_p7 = por %p850_p5, %p849_p4 }
  0x1d   : > { %p853_p10 = por %p852_p8, %p851_p7 }
  0x1f   : > { %p854_p9 = pnand %p853_p10, %p847_p3 }
  0x21   : > { %857 = shalt.err (!%p854_p9)
}
  0x22   : > { %s858_s26 = scalar_lea.vmem %s1048_s11, 1024  ;;  %s941_s30 = smov [#allocation3]  }
  0x23   : > { %p859_p0 = scmp.ne.s32.totalorder %s1048_s11, %s858_s26  ;;  %s863_s5 = sshll.u32 %s941_s30, 4  ;;  %s864_s5 = int_to_ptr.vmem [resolvable:$false] %s863_s5 }
  0x24   : > { %s865_s6 = scalar_lea.vmem %s864_s5, 2048  ;;  %p866_p11 = scmp.lt.s32.totalorder %s1048_s11, %s864_s5 }
  0x25   : > { %p861_p2 = pnand %p859_p0, %p845_p1  ;;  %p867_p4 = scmp.lt.s32.totalorder %s865_s6, %s858_s26 }
  0x27   : > { %p862_p12 = pneg %p861_p2  ;;  %p868_p5 = por %p867_p4, %p866_p11 }
  0x29   : > { %p869_p7 = pnand %p868_p5, %p862_p12 }
  0x2b   : > { %872 = shalt.err (!%p869_p7)
}
  0x2c   : > { %s942_s7 = smov 256   ;;  %s943_s8 = smov 16  }
  0x2d   : > { %772 = dma.hbm_to_vmem [thread:$0]  (!%p1044_p13), %s1040_s9, 1024, %s1048_s11, %s1050_s13, %s942_s7, %s942_s7, %s943_s8  }
  0x2e   : > { %p741_p9 = scmp.ge.s32.totalorder %s939_s20, 1  ;;  %p182_p1 = scmp.lt.s32.totalorder %s939_s20, 3 }
  0x30   : > { %p183_p3 = pnand %p741_p9, %p182_p1 }
  0x31   : > { %s1081_s10 = sand.u32 (!%p183_p3), 1, %s931_s18  }
  0x32   : > { %186 = sbr.rel (%p183_p3) target bundleno = 813 (0x32d), region = 36  ;;  %s742_s14 = sshll.u32 (!%p183_p3), %s1081_s10, 6 }
  0x33   : > { %s189_s15 = scalar_lea.sflag (!%p183_p3), [#allocation4], %s1081_s10  ;;  %s192_s16 = scalar_lea.vmem (!%p183_p3), [#allocation3], %s742_s14 }
  0x39   : > { %918 = dma.done.wait (%p1020_p6), %s189_s15, 1024  }
  0x3a   : > { %920 = vsyncadd (%p1020_p6), %s189_s15, 4294966272  ;;  %v944_v0 = vmov 0   ;;  %v1094_v1 = vld [vmem:[%s192_s16 + $0x8] sm:$0xff]  ;;  %v1096_v2 = vld [vmem:[%s192_s16 + $0x18] sm:$0xff]  ;;  %vm297_vm0 = vcmask 261120   ;;  %vm536_vm5 = vcmask 1043456  }
  0x3b   : > { %342 = vmatprep.mubr.bf16.mxu0 %v944_v0  ;;  %817 = vset.pattern.permute.xlu0 %v944_v0  ;;  %v1098_v3 = vld [vmem:[%s192_s16] sm:$0xff]  ;;  %v234_v4 = vpack.c.bf16 %v1096_v2, %v1094_v1  ;;  %v1102_v5 = vld [vmem:[%s192_s16 + $0x10] sm:$0xff]  ;;  %v1104_v6 = vld [vmem:[%s192_s16 + $0x28] sm:$0xff]  ;;  %vm526_vm6 = vcmask 64512   ;;  %s606_s23 = sld [smem:[#allocation2]]  ;;  %s762_s24 = sshll.u32 %s998_s3, 10 }
  0x3c   : > { %818 = vset.pattern.permute.xlu1 %v944_v0  ;;  %v1106_v7 = vld [vmem:[%s192_s16 + $0x38] sm:$0xff]  ;;  %v233_v8 = vpack.c.bf16 %v1102_v5, %v1098_v3  ;;  %v1112_v10 = vld [vmem:[%s192_s16 + $0x20] sm:$0xff]  ;;  %v1114_v11 = vld [vmem:[%s192_s16 + $0x30] sm:$0xff]  ;;  %s216_s26 = scalar_lea.vmem [#allocation6], %s742_s14  ;;  %s1211_s5 = scalar_lea.hbm %s1265_s4, %s762_s24 }
  0x3d   : > { %v236_v9 = vpack.c.bf16 %v1106_v7, %v1104_v6  ;;  %310 = vmatprep.subr.bf16.mxu0 %v234_v4  ;;  %v235_v12 = vpack.c.bf16 %v1114_v11, %v1112_v10  ;;  %v238_v13 = vld [vmem:[%s1263_s2 + $0x8] sm:$0xff]  ;;  %v819_v14 = vld [vmem:[%s1262_s1] sm:$0xff]   ;;  %v240_v15 = vld [vmem:[%s1263_s2 + $0x18] sm:$0xff]  ;;  %s662_s30 = sshll.u32 %s216_s26, 4  ;;  %s649_s6 = scalar_lea.sflag [#allocation5], %s1081_s10  ;;  %s1213_s30 = int_to_ptr.vmem [resolvable:$true] %s662_s30 }
  0x3e   : > { %311 = vmatpush1.bf16.msra.mxu0 %v233_v8  ;;  %251 = vperm.xlu0 %817, %v238_v13   ;;  %v239_v16 = vld [vmem:[%s1263_s2 + $0x10] sm:$0xff]  ;;  %v241_v17 = vld [vmem:[%s1263_s2 + $0x20] sm:$0xff]  ;;  %v242_v18 = vld [vmem:[%s1263_s2 + $0x28] sm:$0xff]  ;;  %s873_s7 = scalar_lea.vmem %s1213_s30, 1024  ;;  %p1272_p11 = scmp.ne.s32.totalorder %s1269_s28, 0 }
  0x3f   : > { %312 = vmatprep.subr.bf16.mxu0 %v236_v9  ;;  %261 = vperm.xlu1 %818, %v240_v15   ;;  %v243_v19 = vld [vmem:[%s1263_s2 + $0x30] sm:$0xff]  ;;  %v820_v20 = vld [vmem:[%s1262_s1 + $0x8] sm:$0xff]   ;;  %v237_v21 = vld [vmem:[%s1263_s2] sm:$0xff]  ;;  %p874_p6 = scmp.ne.s32.totalorder %s1213_s30, %s873_s7  ;;  %s946_s8 = smov [#allocation6]  }
  0x40   : > { %v821_v22 = vld [vmem:[%s1262_s1 + $0x10] sm:$0xff]   ;;  %v822_v23 = vld [vmem:[%s1262_s1 + $0x18] ss:$0 sps:$4 sm:$0xff]   ;;  %s877_s15 = sshll.u32 %s946_s8, 4  ;;  %s878_s15 = int_to_ptr.vmem [resolvable:$false] %s877_s15 }
  0x41   : > { %p875_p12 = pnand %p874_p6, %p1272_p11  ;;  %s879_s16 = scalar_lea.vmem %s878_s15, 2048 }
  0x42   : > { %313 = vmatpush1.bf16.msra.mxu0 %v235_v12  ;;  %256 = vperm.xlu0 %817, %v239_v16   ;;  %p880_p8 = scmp.lt.s32.totalorder %s1213_s30, %s878_s15  ;;  %p881_p10 = scmp.lt.s32.totalorder %s879_s16, %s873_s7 }
  0x43   : > { %266 = vperm.xlu1 %818, %v241_v17   ;;  %p876_p13 = pneg %p875_p12 }
  0x44   : > { %p882_p0 = por %p881_p10, %p880_p8 }
  0x45   : > { %748 = vmatmul.mubr.msk.bf16.vlgmr.msra.gmra.mrb[0].mxu0 %vm297_vm0, %v819_v14 }
  0x46   : > { %352 = vmatprep.mubr.bf16.mxu0 %v944_v0  ;;  %271 = vperm.xlu0 %817, %v242_v18   ;;  %p883_p2 = pnand %p882_p0, %p876_p13 }
  0x47   : > { %276 = vperm.xlu1 %818, %v243_v19  }
  0x4a   : > { %246 = vperm.xlu0 %817, %v237_v21  }
  0x4d   : > { %749 = vmatmul.mubr.msk.bf16.gmra.mrb[4].mxu0 %vm297_vm0, %v820_v20 }
  0x4e   : > { %362 = vmatprep.mubr.bf16.mxu0 %v944_v0 }
  0x55   : > { %750 = vmatmul.mubr.msk.bf16.gmra.mrb[8].mxu0 %vm297_vm0, %v821_v22 }
  0x56   : > { %372 = vmatprep.mubr.bf16.mxu0 %v944_v0 }
  0x5d   : > { %751 = vmatmul.mubr.msk.bf16.gmra.mrb[12].mxu0 %vm297_vm0, %v822_v23 }
  0xbd   : > { %v252_v24 = vpop.permute.xlu0 %251 }
  0xbe   : > { %v262_v47 = vpop.permute.xlu1 %261 }
  0xc1   : > { %v257_v25 = vpop.permute.xlu0 %256 }
  0xc2   : > { %v267_v59 = vpop.permute.xlu1 %266 }
  0xc5   : > { %v272_v26 = vpop.permute.xlu0 %271 }
  0xc9   : > { %v247_v27 = vpop.permute.xlu0 %246 }
 0x118   : > { %v344_v28 = vpop.f32.mrb[0].mxu0 }
 0x119   : > { %v1158_v29 = vadd.f32 %v344_v28, %v247_v27  ;;  %v346_v30 = vpop.f32.mrb[1].mxu0 }
 0x11a   : > { %v1160_v31 = vadd.f32 %v346_v30, %v247_v27  ;;  %v348_v32 = vpop.f32.mrb[2].mxu0 }
 0x11b   : > { %v385_v33 = vand.u32 2147483647, %v1158_v29  ;;  %v1163_v34 = vadd.f32 %v348_v32, %v252_v24  ;;  %v350_v35 = vpop.f32.mrb[3].mxu0 }
 0x11c   : > { %v386_v36 = vand.u32 2147483647, %v1160_v31  ;;  %v1166_v37 = vadd.f32 %v350_v35, %v252_v24 }
 0x11d   : > { %v389_v38 = vsub.f32 0.0, %v385_v33  ;;  %v387_v39 = vand.u32 2147483647, %v1163_v34 }
 0x11e   : > { %v390_v40 = vsub.f32 0.0, %v386_v36  ;;  %v388_v41 = vand.u32 2147483647, %v1166_v37 }
 0x11f   : > { %v393_v42 = vmul.f32 1.442695, %v389_v38  ;;  %v391_v43 = vsub.f32 0.0, %v387_v39 }
 0x120   : > { %v395_v44 = vmul.f32 1.442695, %v390_v40  ;;  %v392_v45 = vsub.f32 0.0, %v388_v41  ;;  %v354_v46 = vpop.f32.mrb[4].mxu0 }
 0x121   : > { %823 = vpow2.f32 %v393_v42  ;;  %v397_v48 = vmul.f32 1.442695, %v391_v43  ;;  %v356_v49 = vpop.f32.mrb[5].mxu0  ;;  %v1170_v52 = vadd.f32 %v354_v46, %v257_v25 }
 0x122   : > { %825 = vpow2.f32 %v395_v44  ;;  %v399_v50 = vmul.f32 1.442695, %v392_v45  ;;  %v358_v51 = vpop.f32.mrb[6].mxu0  ;;  %v357_v55 = vadd.f32 %v356_v49, %v257_v25 }
 0x123   : > { %827 = vpow2.f32 %v397_v48  ;;  %v1172_v53 = vadd.f32 %v358_v51, %v262_v47  ;;  %v360_v54 = vpop.f32.mrb[7].mxu0  ;;  %v383_v51 = vmax.f32 %v1163_v34, 0.0 }
 0x124   : > { %829 = vpow2.f32 %v399_v50  ;;  %v361_v56 = vadd.f32 %v360_v54, %v262_v47 }
 0x125   : > { %v441_v57 = vpack.c.bf16 %v1172_v53, %v1170_v52 }
 0x126   : > { %v442_v58 = vpack.c.bf16 %v361_v56, %v357_v55 }
 0x128   : > { %v364_v60 = vpop.f32.mrb[8].mxu0  ;;  %497 = vmatprep.mubr.bf16.mxu0 %v442_v58 }
 0x129   : > { %v366_v61 = vpop.f32.mrb[9].mxu0  ;;  %v1176_v62 = vadd.f32 %v364_v60, %v267_v59  ;;  %v382_v60 = vmax.f32 %v1160_v31, 0.0 }
 0x12a   : > { %v368_v63 = vpop.f32.mrb[10].mxu0  ;;  %v367_v13 = vadd.f32 %v366_v61, %v267_v59  ;;  %v384_v61 = vmax.f32 %v1166_v37, 0.0 }
 0x12b   : > { %v824_v4 = vpop.eup %823  ;;  %v1178_v8 = vadd.f32 %v368_v63, %v272_v26  ;;  %v370_v9 = vpop.f32.mrb[11].mxu0 }
 0x12c   : > { %v826_v12 = vpop.eup %825  ;;  %v371_v14 = vadd.f32 %v370_v9, %v272_v26  ;;  %v401_v16 = vadd.f32 1.0, %v824_v4  ;;  %v404_v33 = vmul.f32 -0.5, %v824_v4  ;;  %v407_v50 = vand.u32 2147483647, %v824_v4 }
 0x12d   : > { %v828_v15 = vpop.eup %827  ;;  %v410_v17 = vadd.f32 1.0, %v826_v12  ;;  %v443_v18 = vpack.c.bf16 %v1178_v8, %v1176_v62  ;;  %v413_v28 = vmul.f32 -0.5, %v826_v12  ;;  %v416_v39 = vand.u32 2147483647, %v826_v12 }
 0x12e   : > { %v830_v19 = vpop.eup %829  ;;  %v419_v20 = vadd.f32 1.0, %v828_v15  ;;  %v444_v21 = vpack.c.bf16 %v371_v14, %v367_v13  ;;  %v422_v27 = vmul.f32 -0.5, %v828_v15  ;;  %v425_v36 = vand.u32 2147483647, %v828_v15 }
 0x12f   : > { %831 = vlog2.f32 %v410_v17  ;;  %v428_v23 = vadd.f32 1.0, %v830_v19  ;;  %v431_v30 = vmul.f32 -0.5, %v830_v19  ;;  %v414_v35 = vadd.f32 1.0, %v413_v28 }
 0x130   : > { %833 = vlog2.f32 %v419_v20  ;;  %v1182_v22 = vpop.f32.mrb[12].mxu0  ;;  %505 = vmatprep.mubr.bf16.mxu1 %v444_v21  ;;  %v423_v32 = vadd.f32 1.0, %v422_v27  ;;  %v434_v46 = vand.u32 2147483647, %v830_v19  ;;  %v405_v47 = vadd.f32 1.0, %v404_v33 }
 0x131   : > { %835 = vlog2.f32 %v401_v16  ;;  %v376_v24 = vpop.f32.mrb[13].mxu0  ;;  %v432_v42 = vadd.f32 1.0, %v431_v30  ;;  %v415_v48 = vmul.f32 %v826_v12, %v414_v35  ;;  %vm426_vm1 = vcmp.lt.f32.partialorder %v425_v36, 0.0004427343 }
 0x132   : > { %v378_v25 = vpop.f32.mrb[14].mxu0  ;;  %837 = vlog2.f32 %v428_v23  ;;  %v424_v45 = vmul.f32 %v828_v15, %v423_v32  ;;  %vm417_vm2 = vcmp.lt.f32.partialorder %v416_v39, 0.0004427343  ;;  %vm435_vm3 = vcmp.lt.f32.partialorder %v434_v46, 0.0004427343 }
 0x133   : > { %v379_v26 = vpop.f32.mrb[15].mxu0  ;;  %v433_v59 = vmul.f32 %v830_v19, %v432_v42  ;;  %v406_v63 = vmul.f32 %v824_v4, %v405_v47  ;;  %vm408_vm4 = vcmp.lt.f32.partialorder %v407_v50, 0.0004427343  ;;  %v381_v16 = vmax.f32 %v1158_v29, 0.0  ;;  %v277_v19 = vpop.permute.xlu1 %276 }
 0x134   : > { %v377_v31 = vadd.f32 %v376_v24, %v277_v19  ;;  %v375_v23 = vadd.f32 %v1182_v22, %v277_v19  ;;  %v449_v24 = vlaneseq  ;;  %v945_v39 = vmov 0.0  }
 0x136   : > { %v446_v4 = vpack.c.bf16 %v377_v31, %v377_v31  ;;  %v445_v25 = vpack.c.bf16 %v375_v23, %v375_v23  ;;  %v450_v52 = vshrl.u32 %v449_v24, 7 }
 0x138   : > { %v454_v22 = vadd.s32 32, %v450_v52 }
 0x139   : > { %v832_v38 = vpop.eup %831 }
 0x13a   : > { %v834_v40 = vpop.eup %833  ;;  %v412_v41 = vmul.f32 0.6931472, %v832_v38  ;;  %vm459_vm7 = vcmp.eq.s32.totalorder %v454_v22, 32 }
 0x13b   : > { %v836_v43 = vpop.eup %835  ;;  %v421_v44 = vmul.f32 0.6931472, %v834_v40  ;;  %v464_v40 = vsel %vm459_vm7, 1e-06, %v945_v39 }
 0x13c   : > { %v838_v49 = vpop.eup %837  ;;  %v403_v55 = vmul.f32 0.6931472, %v836_v43  ;;  %v418_v56 = vsel %vm417_vm2, %v415_v48, %v412_v41 }
 0x13d   : > { %v427_v54 = vsel %vm426_vm1, %v424_v45, %v421_v44  ;;  %v430_v58 = vmul.f32 0.6931472, %v838_v49  ;;  %v438_v12 = vadd.f32 %v418_v56, %v382_v60 }
 0x13e   : > { %v439_v9 = vadd.f32 %v427_v54, %v383_v51  ;;  %v409_v15 = vsel %vm408_vm4, %v406_v63, %v403_v55 }
 0x13f   : > { %v436_v13 = vsel %vm435_vm3, %v433_v59, %v430_v58  ;;  %v437_v20 = vadd.f32 %v409_v15, %v381_v16  ;;  %v525_v21 = vpack.c.bf16 %v438_v12, %v438_v12 }
 0x140   : > { %v440_v14 = vadd.f32 %v436_v13, %v384_v61  ;;  %v447_v17 = vpack.c.bf16 %v439_v9, %v439_v9  ;;  %v623_v61 = vstv %s606_s23 }
 0x141   : > { %v524_v37 = vpack.c.bf16 %v437_v20, %v437_v20 }
 0x142   : > { %v448_v34 = vpack.c.bf16 %v440_v14, %v440_v14 }
 0x143   : > { %v538_v29 = vsel %vm536_vm5, %v524_v37, 0 }
 0x144   : > { %465 = vmatprep.subr.bf16.mxu0 %v448_v34  ;;  %763 = vmatprep.subr.bf16.mxu1 %v448_v34 }
 0x145   : > { %466 = vmatpush1.bf16.xpose.msra.mxu0 %v447_v17  ;;  %764 = vmatpush1.bf16.xpose.msra.mxu1 %v447_v17 }
 0x146   : > { %752 = vmatprep.subr.msk.bf16.mxu1 %vm536_vm5, %v525_v21 }
 0x14c   : > { %498 = vmatmul.mubr.bf16.vlgmr.msra.gmra.mrb[16].mxu0 %v441_v57  ;;  %506 = vmatmul.mubr.bf16.vlgmr.msra.gmra.mrb[0].mxu1 %v443_v18 }
 0x14d   : > { %544 = vmatpush1.bf16.msra.mxu1 %v538_v29  ;;  %513 = vmatprep.mubr.bf16.mxu1 %v446_v4 }
 0x154   : > { %514 = vmatmul.mubr.bf16.gmra.mrb[4].mxu1 %v445_v25 }
 0x155   : > { %575 = vmatprep.mubr.bf16.mxu1 %v944_v0 }
 0x21f   : > { %v499_v27 = vpop.f32.mrb[16].mxu0  ;;  %v507_v26 = vpop.f32.mrb[0].mxu1 }
 0x220   : > { %v501_v28 = vpop.f32.mrb[17].mxu0  ;;  %v509_v30 = vpop.f32.mrb[1].mxu1 }
 0x221   : > { %v502_v53 = vpop.f32.mrb[18].mxu0  ;;  %v510_v57 = vpop.f32.mrb[2].mxu1 }
 0x222   : > { %v521_v62 = vpack.c.bf16 %v502_v53, %v499_v27  ;;  %v522_v8 = vpack.c.bf16 %v510_v57, %v507_v26  ;;  %v504_v18 = vpop.f32.mrb[19].mxu0  ;;  %v512_v32 = vpop.f32.mrb[3].mxu1 }
 0x224   : > { %753 = vmatmul.mubr.msk.bf16.vlgmr.msra.gmra.mrb[8].mxu1 %vm526_vm6, %v521_v62 }
 0x225   : > { %585 = vmatprep.mubr.bf16.mxu1 %v944_v0 }
 0x227   : > { %v515_v33 = vpop.f32.mrb[4].mxu1 }
 0x228   : > { %v517_v35 = vpop.f32.mrb[5].mxu1  ;;  %v516_v41 = vadd.f32 %v515_v33, %v464_v40 }
 0x229   : > { %v518_v36 = vpop.f32.mrb[6].mxu1 }
 0x22a   : > { %v519_v38 = vpop.f32.mrb[7].mxu1  ;;  %v523_v42 = vpack.c.bf16 %v516_v41, %v516_v41 }
 0x22c   : > { %754 = vmatmul.mubr.msk.bf16.gmra.mrb[12].mxu1 %vm526_vm6, %v522_v8 }
 0x22d   : > { %595 = vmatprep.mubr.bf16.mxu1 %v944_v0  ;;  %v609_v0 = vsub.s32 0, %v450_v52 }
 0x234   : > { %755 = vmatmul.mubr.msk.bf16.gmra.mrb[16].mxu1 %vm526_vm6, %v523_v42 }
 0x2f7   : > { %v577_v43 = vpop.f32.mrb[8].mxu1 }
 0x2f8   : > { %v579_v44 = vpop.f32.mrb[9].mxu1 }
 0x2f9   : > { %v581_v45 = vpop.f32.mrb[10].mxu1 }
 0x2fa   : > { %v583_v46 = vpop.f32.mrb[11].mxu1 }
 0x2ff   : > { %v587_v47 = vpop.f32.mrb[12].mxu1 }
 0x300   : > { %v589_v48 = vpop.f32.mrb[13].mxu1 }
 0x301   : > { %v591_v49 = vpop.f32.mrb[14].mxu1 }
 0x302   : > { %v593_v50 = vpop.f32.mrb[15].mxu1 }
 0x307   : > { %v597_v51 = vpop.f32.mrb[16].mxu1 }
 0x308   : > { %839 = vrcp.f32 %v597_v51  ;;  %v599_v54 = vpop.f32.mrb[17].mxu1 }
 0x309   : > { %841 = vrcp.f32 %v599_v54  ;;  %v601_v55 = vpop.f32.mrb[18].mxu1 }
 0x30a   : > { %v602_v56 = vpop.f32.mrb[19].mxu1 }
 0x312   : > { %v840_v58 = vpop.eup %839 }
 0x313   : > { %v842_v59 = vpop.eup %841  ;;  %v610_v60 = vrot.slane %v840_v58, %v609_v0 }
 0x314   : > { %v614_v63 = vrot.slane %v842_v59, %v609_v0 }
 0x315   : > { %v615_v9 = vmul.f32 %v610_v60, %v577_v43  ;;  %v617_v13 = vmul.f32 %v610_v60, %v581_v45  ;;  %v619_v12 = vmul.f32 %v610_v60, %v587_v47  ;;  %v621_v14 = vmul.f32 %v610_v60, %v591_v49 }
 0x316   : > { %v616_v15 = vmul.f32 %v614_v63, %v579_v44  ;;  %v618_v16 = vmul.f32 %v614_v63, %v583_v46  ;;  %v620_v34 = vmul.f32 %v614_v63, %v589_v48  ;;  %v622_v17 = vmul.f32 %v614_v63, %v593_v50 }
 0x317   : > { %v624_v20 = vmul.f32 %v623_v61, %v615_v9  ;;  %v626_v21 = vmul.f32 %v623_v61, %v617_v13  ;;  %v628_v19 = vmul.f32 %v623_v61, %v619_v12  ;;  %v630_v31 = vmul.f32 %v623_v61, %v621_v14 }
 0x318   : > { %v625_v37 = vmul.f32 %v623_v61, %v616_v15  ;;  %v627_v4 = vmul.f32 %v623_v61, %v618_v16  ;;  %v629_v29 = vmul.f32 %v623_v61, %v620_v34  ;;  %v631_v23 = vmul.f32 %v623_v61, %v622_v17 }
 0x319   : > { %v632_v25 = vadd.f32 %v624_v20, %v1098_v3  ;;  %v634_v24 = vadd.f32 %v626_v21, %v1102_v5  ;;  %v636_v27 = vadd.f32 %v628_v19, %v1112_v10  ;;  %v638_v26 = vadd.f32 %v630_v31, %v1114_v11 }
 0x31a   : > { %v633_v28 = vadd.f32 %v625_v37, %v1094_v1  ;;  %v635_v3 = vadd.f32 %v627_v4, %v1096_v2  ;;  %v637_v5 = vadd.f32 %v629_v29, %v1104_v6  ;;  %v639_v10 = vadd.f32 %v631_v23, %v1106_v7 }
 0x31b   : > { %640 = vst [vmem:[%s216_s26] sm:$0xff] %v632_v25  ;;  %642 = vst [vmem:[%s216_s26 + $0x10] sm:$0xff] %v634_v24 }
 0x31c   : > { %644 = vst [vmem:[%s216_s26 + $0x20] sm:$0xff] %v636_v27  ;;  %646 = vst [vmem:[%s216_s26 + $0x30] sm:$0xff] %v638_v26 }
 0x31d   : > { %641 = vst [vmem:[%s216_s26 + $0x8] sm:$0xff] %v633_v28  ;;  %643 = vst [vmem:[%s216_s26 + $0x18] sm:$0xff] %v635_v3 }
 0x31e   : > { %645 = vst [vmem:[%s216_s26 + $0x28] sm:$0xff] %v637_v5  ;;  %647 = vst [vmem:[%s216_s26 + $0x38] sm:$0xff] %v639_v10 }
 0x31f   : > { %886 = shalt.err (!%p883_p2)
}
 0x320   : > { %s887_s27 = scalar_lea.hbm %s1211_s5, 1024  ;;  %s891_s12 = scalar_lea.hbm %s1265_s4, 2048 }
 0x321   : > { %p888_p4 = scmp.ne.s32.totalorder %s1211_s5, %s887_s27  ;;  %p892_p9 = scmp.lt.u32.totalorder %s1211_s5, %s1265_s4 }
 0x322   : > { %p893_p1 = scmp.lt.u32.totalorder %s891_s12, %s887_s27  ;;  %p895_p6 = scmp.lt.u32.totalorder %s887_s27, %s1211_s5 }
 0x323   : > { %p889_p5 = pnand %p888_p4, %p1272_p11 }
 0x324   : > { %p894_p3 = por %p893_p1, %p892_p9 }
 0x325   : > { %p890_p7 = pneg %p889_p5 }
 0x326   : > { %p896_p12 = por %p895_p6, %p894_p3 }
 0x328   : > { %p897_p13 = pnand %p896_p12, %p890_p7 }
 0x32a   : > { %900 = shalt.err (!%p897_p13)
}
 0x32b   : > { %s947_s23 = smov 256   ;;  %s948_s24 = smov 16  }
 0x32c   : > { %767 = dma.vmem_to_hbm [thread:$0]  (%p1272_p11), %s1213_s30, 1024, %s1211_s5, %s649_s6, %s947_s23, %s947_s23, %s948_s24  }
 0x32d PF: > { %s677_s26 = sand.u32 1, %s927_s17   ;;  %p1273_p8 = scmp.ne.s32.totalorder %s1270_s29, 0 }
 0x32e   : > { %p1274_p10 = scmp.ge.s32.totalorder %s939_s20, 2  ;;  %s678_s3 = scalar_lea.sflag [#allocation5], %s677_s26 }
 0x330   : > { %p774_p0 = pnand %p1274_p10, %p1273_p8 }
 0x332   : > { %922 = dma.done.wait (!%p774_p0), %s678_s3, 1024  }
 0x333   : > { %924 = vsyncadd (!%p774_p0), %s678_s3, 4294966272  ;;  %p18_p2 = scmp.ge.s32.totalorder %s1002_s22, 4   ;;  %s1275_s17 = smov %s931_s18 }
 0x334   : > { %s1276_s18 = smov %s935_s19  ;;  %s1277_s19 = smov %s1014_s25 }
 0x335   : > { %s1278_s20 = smov %s1002_s22  ;;  %20 = sbr.rel (!%p18_p2) target bundleno = 7 (0x7), region = 81 }
 0x33c   :  { %683 = vsyncpa [#allocation4], 1 }
 0x33d   :  { %685 = vsyncpa [#allocation4 + $0x1], 1 }
 0x33e   :  { %686 = vsyncpa [#allocation5], 1 }
 0x33f   :  { %688 = vsyncpa [#allocation5 + $0x1], 1 }

</bundles_post_ra>
